<compile_context>
chip_gen: v7x
topology: tpu7x:2x2x1
jax: 0.10.0
libtpu: 0.0.40
codegen_flags: <defaults>
</compile_context>

<pallas_src>
import jax
import jax.numpy as jnp
from jax import lax
from jax.experimental import pallas as pl
from jax.experimental.pallas import tpu as pltpu

# ----- small, deterministic problem sizes -----
VOCAB, EMBED, HIDDEN = 50, 32, 32
B, T = 2, 8
V_PAD = 64                      # vocab padded to a multiple of 8; 2*V_PAD = 128 lanes


# ---------------------------------------------------------------------------
# Fused encoder kernel.
#   ids_f_ref : (T*B, 1) int32  time-major forward ids        (row r = t*B + b)
#   ids_b_ref : (T*B, 1) int32  time-REVERSED ids + V_PAD offset
#   p_ref     : (2*V_PAD, 8H)   folded+biased projected table, gate-interleaved
#   whh_ref   : (2H, 8H)        block-diagonal recurrent weights
#   out_ref   : (B, T*2H)       lane-dense; per t: [h_f(t) | h_b(t)]
#   hn_ref / cn_ref : (2, B, H) (dir 0 = forward, dir 1 = backward)
# Gate column layout (each group 2H=64 lanes): [ i | f | g | o ],
# within a group: forward H lanes then backward H lanes.
# ---------------------------------------------------------------------------
def encoder_kernel(ids_f_ref, ids_b_ref, p_ref, whh_ref,
                   out_ref, hn_ref, cn_ref):
    H = HIDDEN
    H2 = 2 * H

    # ---- single prologue MXU op: one-hot (both halves) @ projected table ----
    iota = lax.broadcasted_iota(jnp.int32, (T * B, 2 * V_PAD), 1)
    onehot = ((iota == ids_f_ref[...]) |
              (iota == ids_b_ref[...])).astype(jnp.float32)      # (T*B, 128)
    # row r = s*B + b  ->  forward gates for time s, backward gates for time T-1-s
    xp = jnp.dot(onehot, p_ref[...],
                 preferred_element_type=jnp.float32)             # (T*B, 8H)

    whh = whh_ref[...]                                           # (2H, 8H)

    h = jnp.zeros((B, H2), jnp.float32)     # [h_f | h_b]
    c = jnp.zeros((B, H2), jnp.float32)     # [c_f | c_b]
    hs = [None] * T

    # ---- fused, fully-unrolled recurrence: one matmul + 2 EUP ops / step ----
    for s in range(T):
        gates = xp[s * B:(s + 1) * B, :] + jnp.dot(
            h, whh, preferred_element_type=jnp.float32)          # (B, 8H)
        sig = jax.nn.sigmoid(gates)
        th = jnp.tanh(gates)
        i_g = sig[:, 0 * H2:1 * H2]
        f_g = sig[:, 1 * H2:2 * H2]
        g_g = th[:, 2 * H2:3 * H2]
        o_g = sig[:, 3 * H2:4 * H2]
        c = f_g * c + i_g * g_g
        h = o_g * jnp.tanh(c)
        hs[s] = h                            # [h_f(s) | h_b(T-1-s)]

    # ---- epilogue: paired steps swap backward halves via VPU lane select ----
    lane = lax.broadcasted_iota(jnp.int32, (B, H2), 1)
    fwd_mask = lane < H
    outs = [None] * T
    for t in range(T):
        # time t output = [ h_f(t) | h_b(t) ] = fwd half of hs[t], bwd half of hs[T-1-t]
        outs[t] = jnp.where(fwd_mask, hs[t], hs[T - 1 - t])
    out_ref[...] = jnp.concatenate(outs, axis=1)                 # (B, T*2H)

    # final states: hs[T-1] = [h_f(T-1) | h_b(0)],  c = [c_f(T-1) | c_b(0)]
    hn_ref[0] = hs[T - 1][:, :H]
    hn_ref[1] = hs[T - 1][:, H:]
    cn_ref[0] = c[:, :H]
    cn_ref[1] = c[:, H:]


# ---------------------------------------------------------------------------
# Parameter preprocessing (done once, outside the hot path).
#   * folds table @ Wih^T (+ summed biases) per direction into P_big
#   * interleaves gate columns so each gate group is a 64-lane block
#   * builds block-diagonal Whh of shape (2H, 8H)
# ---------------------------------------------------------------------------
def prepare_params(table, wih_f, whh_f, bih_f, bhh_f,
                   wih_b, whh_b, bih_b, bhh_b):
    H = HIDDEN
    proj_f = table @ wih_f.T + (bih_f + bhh_f)        # (V, 4H), gate order i,f,g,o
    proj_b = table @ wih_b.T + (bih_b + bhh_b)        # (V, 4H)

    p_big = jnp.zeros((2 * V_PAD, 8 * H), jnp.float32)
    whh_bd = jnp.zeros((2 * H, 8 * H), jnp.float32)
    for g in range(4):
        # forward gate g -> columns [2g*H, (2g+1)*H); backward -> next H columns
        p_big = p_big.at[:VOCAB, 2 * g * H:(2 * g + 1) * H].set(
            proj_f[:, g * H:(g + 1) * H])
        p_big = p_big.at[V_PAD:V_PAD + VOCAB,
                         (2 * g + 1) * H:(2 * g + 2) * H].set(
            proj_b[:, g * H:(g + 1) * H])
        whh_bd = whh_bd.at[:H, 2 * g * H:(2 * g + 1) * H].set(
            whh_f[g * H:(g + 1) * H, :].T)
        whh_bd = whh_bd.at[H:, (2 * g + 1) * H:(2 * g + 2) * H].set(
            whh_b[g * H:(g + 1) * H, :].T)
    return (p_big, whh_bd)


# ---------------------------------------------------------------------------
# Forward wrapper: one fused pallas_call, metadata-only reshape on output.
# ---------------------------------------------------------------------------
@jax.jit
def encoder_forward(x_ids, params):
    p_big, whh_bd = params

    ids = x_ids.astype(jnp.int32)
    ids_f = ids.T.reshape(T * B, 1)                       # time-major forward
    ids_b = ids[:, ::-1].T.reshape(T * B, 1) + V_PAD      # time-reversed, offset

    out_flat, h_n, c_n = pl.pallas_call(
        encoder_kernel,
        out_shape=(jax.ShapeDtypeStruct((B, T * 2 * HIDDEN), jnp.float32),
                   jax.ShapeDtypeStruct((2, B, HIDDEN), jnp.float32),
                   jax.ShapeDtypeStruct((2, B, HIDDEN), jnp.float32)),
        in_specs=[pl.BlockSpec(memory_space=pltpu.MemorySpace.VMEM)] * 4,
        out_specs=(pl.BlockSpec(memory_space=pltpu.MemorySpace.VMEM),) * 3,
    )(ids_f, ids_b, p_big, whh_bd)

    output = out_flat.reshape(B, T, 2 * HIDDEN)           # batch_first
    return output, (h_n, c_n)


# ---------------------------------------------------------------------------
# Pure-JAX reference (numeric sanity check).
# ---------------------------------------------------------------------------
def _ref_lstm_dir(x_bte, wih, whh, b):
    def step(carry, xt):
        h, c = carry
        gates = xt @ wih.T + h @ whh.T + b
        i, f, g, o = jnp.split(gates, 4, axis=-1)
        i, f, o = jax.nn.sigmoid(i), jax.nn.sigmoid(f), jax.nn.sigmoid(o)
        g = jnp.tanh(g)
        c = f * c + i * g
        h = o * jnp.tanh(c)
        return (h, c), h

    init = (jnp.zeros((B, HIDDEN), jnp.float32),
            jnp.zeros((B, HIDDEN), jnp.float32))
    (h, c), hs = lax.scan(step, init, jnp.transpose(x_bte, (1, 0, 2)))
    return jnp.transpose(hs, (1, 0, 2)), h, c


def _ref_encoder(x_ids, table, wih_f, whh_f, bih_f, bhh_f,
                 wih_b, whh_b, bih_b, bhh_b):
    emb = table[x_ids]  # (B, T, E)
    out_f, h_f, c_f = _ref_lstm_dir(emb, wih_f, whh_f, bih_f + bhh_f)
    out_b_rev, h_b, c_b = _ref_lstm_dir(emb[:, ::-1, :], wih_b, whh_b,
                                        bih_b + bhh_b)
    out_b = out_b_rev[:, ::-1, :]
    output = jnp.concatenate([out_f, out_b], axis=-1)
    return output, (jnp.stack([h_f, h_b]), jnp.stack([c_f, c_b]))


if __name__ == "__main__":
    key = jax.random.PRNGKey(0)
    ks = jax.random.split(key, 10)

    # deterministic synthetic parameters (shapes match nn.Embedding + nn.LSTM)
    table = (jax.random.normal(ks[0], (VOCAB, EMBED)) * 0.1).astype(jnp.float32)
    wih_f = (jax.random.normal(ks[1], (4 * HIDDEN, EMBED)) * 0.1).astype(jnp.float32)
    whh_f = (jax.random.normal(ks[2], (4 * HIDDEN, HIDDEN)) * 0.1).astype(jnp.float32)
    bih_f = (jax.random.normal(ks[3], (4 * HIDDEN,)) * 0.1).astype(jnp.float32)
    bhh_f = (jax.random.normal(ks[4], (4 * HIDDEN,)) * 0.1).astype(jnp.float32)
    wih_b = (jax.random.normal(ks[5], (4 * HIDDEN, EMBED)) * 0.1).astype(jnp.float32)
    whh_b = (jax.random.normal(ks[6], (4 * HIDDEN, HIDDEN)) * 0.1).astype(jnp.float32)
    bih_b = (jax.random.normal(ks[7], (4 * HIDDEN,)) * 0.1).astype(jnp.float32)
    bhh_b = (jax.random.normal(ks[8], (4 * HIDDEN,)) * 0.1).astype(jnp.float32)

    x_ids = jax.random.randint(ks[9], (B, T), 0, VOCAB, dtype=jnp.int32)

    raw_params = (table, wih_f, whh_f, bih_f, bhh_f,
                  wih_b, whh_b, bih_b, bhh_b)
    params = prepare_params(*raw_params)

    output, (h_n, c_n) = encoder_forward(x_ids, params)
    jax.block_until_ready((output, h_n, c_n))

    # sanity check against the pure-JAX reference
    ref_out, (ref_h, ref_c) = _ref_encoder(x_ids, *raw_params)
    assert output.shape == (B, T, 2 * HIDDEN)
    assert h_n.shape == (2, B, HIDDEN) and c_n.shape == (2, B, HIDDEN)
    assert jnp.allclose(output, ref_out, rtol=1e-3, atol=1e-3)
    assert jnp.allclose(h_n, ref_h, rtol=1e-3, atol=1e-3)
    assert jnp.allclose(c_n, ref_c, rtol=1e-3, atol=1e-3)

    print("KERNEL_OK")
</pallas_src>

<mosaic_0001>
module attributes {stable_mosaic.version = 11 : i64} {
  func.func @encoder_kernel(%arg0: memref<16x1xi32, #tpu.memory_space<vmem>>, %arg1: memref<16x1xi32, #tpu.memory_space<vmem>>, %arg2: memref<128x256xf32, #tpu.memory_space<vmem>>, %arg3: memref<64x256xf32, #tpu.memory_space<vmem>>, %arg4: memref<2x512xf32, #tpu.memory_space<vmem>>, %arg5: memref<2x2x32xf32, #tpu.memory_space<vmem>>, %arg6: memref<2x2x32xf32, #tpu.memory_space<vmem>>) attributes {dimension_semantics = [], scalar_prefetch = 0 : i64, scratch_operands = 0 : i64, tpu.core_type = #tpu.core_type<tc>} {
    %0 = tpu.iota {dimensions = array<i32: 1>} : vector<16x128xi32>
    %c0 = arith.constant 0 : index
    %c0_0 = arith.constant 0 : index
    %1 = vector.load %arg0[%c0, %c0_0] : memref<16x1xi32, #tpu.memory_space<vmem>>, vector<16x1xi32>
    %2 = vector.broadcast %1 : vector<16x1xi32> to vector<16x128xi32>
    %3 = arith.cmpi eq, %0, %2 : vector<16x128xi32>
    %c0_1 = arith.constant 0 : index
    %c0_2 = arith.constant 0 : index
    %4 = vector.load %arg1[%c0_1, %c0_2] : memref<16x1xi32, #tpu.memory_space<vmem>>, vector<16x1xi32>
    %5 = vector.broadcast %4 : vector<16x1xi32> to vector<16x128xi32>
    %6 = arith.cmpi eq, %0, %5 : vector<16x128xi32>
    %7 = arith.ori %3, %6 : vector<16x128xi1>
    %8 = arith.extui %7 : vector<16x128xi1> to vector<16x128xi32>
    %9 = arith.sitofp %8 : vector<16x128xi32> to vector<16x128xf32>
    %c0_3 = arith.constant 0 : index
    %c0_4 = arith.constant 0 : index
    %10 = vector.load %arg2[%c0_3, %c0_4] : memref<128x256xf32, #tpu.memory_space<vmem>>, vector<128x256xf32>
    %cst = arith.constant dense<0.000000e+00> : vector<16x256xf32>
    %11 = tpu.matmul %9, %10, %cst {dimension_numbers = #tpu.dot_dimension_numbers<[1], [0], [0], [1], [0, 0, 1, 1], [], []>} : vector<16x128xf32>, vector<128x256xf32>, vector<16x256xf32> -> vector<16x256xf32>
    %c0_5 = arith.constant 0 : index
    %c0_6 = arith.constant 0 : index
    %12 = vector.load %arg3[%c0_5, %c0_6] : memref<64x256xf32, #tpu.memory_space<vmem>>, vector<64x256xf32>
    %cst_7 = arith.constant 0.000000e+00 : f32
    %13 = vector.broadcast %cst_7 : f32 to vector<2x64xf32>
    %cst_8 = arith.constant 0.000000e+00 : f32
    %14 = vector.broadcast %cst_8 : f32 to vector<2x64xf32>
    %15 = vector.extract_strided_slice %11 {offsets = [0, 0], sizes = [2, 256], strides = [1, 1]} : vector<16x256xf32> to vector<2x256xf32>
    %cst_9 = arith.constant dense<0.000000e+00> : vector<2x256xf32>
    %16 = tpu.matmul %13, %12, %cst_9 {dimension_numbers = #tpu.dot_dimension_numbers<[1], [0], [0], [1], [0, 0, 1, 1], [], []>} : vector<2x64xf32>, vector<64x256xf32>, vector<2x256xf32> -> vector<2x256xf32>
    %17 = arith.addf %15, %16 : vector<2x256xf32>
    %18 = arith.negf %17 : vector<2x256xf32>
    %19 = math.exp %18 : vector<2x256xf32>
    %cst_10 = arith.constant 1.000000e+00 : f32
    %20 = vector.broadcast %cst_10 : f32 to vector<2x256xf32>
    %21 = arith.addf %20, %19 : vector<2x256xf32>
    %22 = arith.divf %20, %21 : vector<2x256xf32>
    %23 = math.tanh %17 : vector<2x256xf32>
    %24 = vector.extract_strided_slice %22 {offsets = [0, 0], sizes = [2, 64], strides = [1, 1]} : vector<2x256xf32> to vector<2x64xf32>
    %25 = vector.extract_strided_slice %22 {offsets = [0, 64], sizes = [2, 64], strides = [1, 1]} : vector<2x256xf32> to vector<2x64xf32>
    %26 = vector.extract_strided_slice %23 {offsets = [0, 128], sizes = [2, 64], strides = [1, 1]} : vector<2x256xf32> to vector<2x64xf32>
    %27 = vector.extract_strided_slice %22 {offsets = [0, 192], sizes = [2, 64], strides = [1, 1]} : vector<2x256xf32> to vector<2x64xf32>
    %28 = arith.mulf %25, %14 : vector<2x64xf32>
    %29 = arith.mulf %24, %26 : vector<2x64xf32>
    %30 = arith.addf %28, %29 : vector<2x64xf32>
    %31 = math.tanh %30 : vector<2x64xf32>
    %32 = arith.mulf %27, %31 : vector<2x64xf32>
    %33 = vector.extract_strided_slice %11 {offsets = [2, 0], sizes = [2, 256], strides = [1, 1]} : vector<16x256xf32> to vector<2x256xf32>
    %cst_11 = arith.constant dense<0.000000e+00> : vector<2x256xf32>
    %34 = tpu.matmul %32, %12, %cst_11 {dimension_numbers = #tpu.dot_dimension_numbers<[1], [0], [0], [1], [0, 0, 1, 1], [], []>} : vector<2x64xf32>, vector<64x256xf32>, vector<2x256xf32> -> vector<2x256xf32>
    %35 = arith.addf %33, %34 : vector<2x256xf32>
    %36 = arith.negf %35 : vector<2x256xf32>
    %37 = math.exp %36 : vector<2x256xf32>
    %cst_12 = arith.constant 1.000000e+00 : f32
    %38 = vector.broadcast %cst_12 : f32 to vector<2x256xf32>
    %39 = arith.addf %38, %37 : vector<2x256xf32>
    %40 = arith.divf %38, %39 : vector<2x256xf32>
    %41 = math.tanh %35 : vector<2x256xf32>
    %42 = vector.extract_strided_slice %40 {offsets = [0, 0], sizes = [2, 64], strides = [1, 1]} : vector<2x256xf32> to vector<2x64xf32>
    %43 = vector.extract_strided_slice %40 {offsets = [0, 64], sizes = [2, 64], strides = [1, 1]} : vector<2x256xf32> to vector<2x64xf32>
    %44 = vector.extract_strided_slice %41 {offsets = [0, 128], sizes = [2, 64], strides = [1, 1]} : vector<2x256xf32> to vector<2x64xf32>
    %45 = vector.extract_strided_slice %40 {offsets = [0, 192], sizes = [2, 64], strides = [1, 1]} : vector<2x256xf32> to vector<2x64xf32>
    %46 = arith.mulf %43, %30 : vector<2x64xf32>
    %47 = arith.mulf %42, %44 : vector<2x64xf32>
    %48 = arith.addf %46, %47 : vector<2x64xf32>
    %49 = math.tanh %48 : vector<2x64xf32>
    %50 = arith.mulf %45, %49 : vector<2x64xf32>
    %51 = vector.extract_strided_slice %11 {offsets = [4, 0], sizes = [2, 256], strides = [1, 1]} : vector<16x256xf32> to vector<2x256xf32>
    %cst_13 = arith.constant dense<0.000000e+00> : vector<2x256xf32>
    %52 = tpu.matmul %50, %12, %cst_13 {dimension_numbers = #tpu.dot_dimension_numbers<[1], [0], [0], [1], [0, 0, 1, 1], [], []>} : vector<2x64xf32>, vector<64x256xf32>, vector<2x256xf32> -> vector<2x256xf32>
    %53 = arith.addf %51, %52 : vector<2x256xf32>
    %54 = arith.negf %53 : vector<2x256xf32>
    %55 = math.exp %54 : vector<2x256xf32>
    %cst_14 = arith.constant 1.000000e+00 : f32
    %56 = vector.broadcast %cst_14 : f32 to vector<2x256xf32>
    %57 = arith.addf %56, %55 : vector<2x256xf32>
    %58 = arith.divf %56, %57 : vector<2x256xf32>
    %59 = math.tanh %53 : vector<2x256xf32>
    %60 = vector.extract_strided_slice %58 {offsets = [0, 0], sizes = [2, 64], strides = [1, 1]} : vector<2x256xf32> to vector<2x64xf32>
    %61 = vector.extract_strided_slice %58 {offsets = [0, 64], sizes = [2, 64], strides = [1, 1]} : vector<2x256xf32> to vector<2x64xf32>
    %62 = vector.extract_strided_slice %59 {offsets = [0, 128], sizes = [2, 64], strides = [1, 1]} : vector<2x256xf32> to vector<2x64xf32>
    %63 = vector.extract_strided_slice %58 {offsets = [0, 192], sizes = [2, 64], strides = [1, 1]} : vector<2x256xf32> to vector<2x64xf32>
    %64 = arith.mulf %61, %48 : vector<2x64xf32>
    %65 = arith.mulf %60, %62 : vector<2x64xf32>
    %66 = arith.addf %64, %65 : vector<2x64xf32>
    %67 = math.tanh %66 : vector<2x64xf32>
    %68 = arith.mulf %63, %67 : vector<2x64xf32>
    %69 = vector.extract_strided_slice %11 {offsets = [6, 0], sizes = [2, 256], strides = [1, 1]} : vector<16x256xf32> to vector<2x256xf32>
    %cst_15 = arith.constant dense<0.000000e+00> : vector<2x256xf32>
    %70 = tpu.matmul %68, %12, %cst_15 {dimension_numbers = #tpu.dot_dimension_numbers<[1], [0], [0], [1], [0, 0, 1, 1], [], []>} : vector<2x64xf32>, vector<64x256xf32>, vector<2x256xf32> -> vector<2x256xf32>
    %71 = arith.addf %69, %70 : vector<2x256xf32>
    %72 = arith.negf %71 : vector<2x256xf32>
    %73 = math.exp %72 : vector<2x256xf32>
    %cst_16 = arith.constant 1.000000e+00 : f32
    %74 = vector.broadcast %cst_16 : f32 to vector<2x256xf32>
    %75 = arith.addf %74, %73 : vector<2x256xf32>
    %76 = arith.divf %74, %75 : vector<2x256xf32>
    %77 = math.tanh %71 : vector<2x256xf32>
    %78 = vector.extract_strided_slice %76 {offsets = [0, 0], sizes = [2, 64], strides = [1, 1]} : vector<2x256xf32> to vector<2x64xf32>
    %79 = vector.extract_strided_slice %76 {offsets = [0, 64], sizes = [2, 64], strides = [1, 1]} : vector<2x256xf32> to vector<2x64xf32>
    %80 = vector.extract_strided_slice %77 {offsets = [0, 128], sizes = [2, 64], strides = [1, 1]} : vector<2x256xf32> to vector<2x64xf32>
    %81 = vector.extract_strided_slice %76 {offsets = [0, 192], sizes = [2, 64], strides = [1, 1]} : vector<2x256xf32> to vector<2x64xf32>
    %82 = arith.mulf %79, %66 : vector<2x64xf32>
    %83 = arith.mulf %78, %80 : vector<2x64xf32>
    %84 = arith.addf %82, %83 : vector<2x64xf32>
    %85 = math.tanh %84 : vector<2x64xf32>
    %86 = arith.mulf %81, %85 : vector<2x64xf32>
    %87 = vector.extract_strided_slice %11 {offsets = [8, 0], sizes = [2, 256], strides = [1, 1]} : vector<16x256xf32> to vector<2x256xf32>
    %cst_17 = arith.constant dense<0.000000e+00> : vector<2x256xf32>
    %88 = tpu.matmul %86, %12, %cst_17 {dimension_numbers = #tpu.dot_dimension_numbers<[1], [0], [0], [1], [0, 0, 1, 1], [], []>} : vector<2x64xf32>, vector<64x256xf32>, vector<2x256xf32> -> vector<2x256xf32>
    %89 = arith.addf %87, %88 : vector<2x256xf32>
    %90 = arith.negf %89 : vector<2x256xf32>
    %91 = math.exp %90 : vector<2x256xf32>
    %cst_18 = arith.constant 1.000000e+00 : f32
    %92 = vector.broadcast %cst_18 : f32 to vector<2x256xf32>
    %93 = arith.addf %92, %91 : vector<2x256xf32>
    %94 = arith.divf %92, %93 : vector<2x256xf32>
    %95 = math.tanh %89 : vector<2x256xf32>
    %96 = vector.extract_strided_slice %94 {offsets = [0, 0], sizes = [2, 64], strides = [1, 1]} : vector<2x256xf32> to vector<2x64xf32>
    %97 = vector.extract_strided_slice %94 {offsets = [0, 64], sizes = [2, 64], strides = [1, 1]} : vector<2x256xf32> to vector<2x64xf32>
    %98 = vector.extract_strided_slice %95 {offsets = [0, 128], sizes = [2, 64], strides = [1, 1]} : vector<2x256xf32> to vector<2x64xf32>
    %99 = vector.extract_strided_slice %94 {offsets = [0, 192], sizes = [2, 64], strides = [1, 1]} : vector<2x256xf32> to vector<2x64xf32>
    %100 = arith.mulf %97, %84 : vector<2x64xf32>
    %101 = arith.mulf %96, %98 : vector<2x64xf32>
    %102 = arith.addf %100, %101 : vector<2x64xf32>
    %103 = math.tanh %102 : vector<2x64xf32>
    %104 = arith.mulf %99, %103 : vector<2x64xf32>
    %105 = vector.extract_strided_slice %11 {offsets = [10, 0], sizes = [2, 256], strides = [1, 1]} : vector<16x256xf32> to vector<2x256xf32>
    %cst_19 = arith.constant dense<0.000000e+00> : vector<2x256xf32>
    %106 = tpu.matmul %104, %12, %cst_19 {dimension_numbers = #tpu.dot_dimension_numbers<[1], [0], [0], [1], [0, 0, 1, 1], [], []>} : vector<2x64xf32>, vector<64x256xf32>, vector<2x256xf32> -> vector<2x256xf32>
    %107 = arith.addf %105, %106 : vector<2x256xf32>
    %108 = arith.negf %107 : vector<2x256xf32>
    %109 = math.exp %108 : vector<2x256xf32>
    %cst_20 = arith.constant 1.000000e+00 : f32
    %110 = vector.broadcast %cst_20 : f32 to vector<2x256xf32>
    %111 = arith.addf %110, %109 : vector<2x256xf32>
    %112 = arith.divf %110, %111 : vector<2x256xf32>
    %113 = math.tanh %107 : vector<2x256xf32>
    %114 = vector.extract_strided_slice %112 {offsets = [0, 0], sizes = [2, 64], strides = [1, 1]} : vector<2x256xf32> to vector<2x64xf32>
    %115 = vector.extract_strided_slice %112 {offsets = [0, 64], sizes = [2, 64], strides = [1, 1]} : vector<2x256xf32> to vector<2x64xf32>
    %116 = vector.extract_strided_slice %113 {offsets = [0, 128], sizes = [2, 64], strides = [1, 1]} : vector<2x256xf32> to vector<2x64xf32>
    %117 = vector.extract_strided_slice %112 {offsets = [0, 192], sizes = [2, 64], strides = [1, 1]} : vector<2x256xf32> to vector<2x64xf32>
    %118 = arith.mulf %115, %102 : vector<2x64xf32>
    %119 = arith.mulf %114, %116 : vector<2x64xf32>
    %120 = arith.addf %118, %119 : vector<2x64xf32>
    %121 = math.tanh %120 : vector<2x64xf32>
    %122 = arith.mulf %117, %121 : vector<2x64xf32>
    %123 = vector.extract_strided_slice %11 {offsets = [12, 0], sizes = [2, 256], strides = [1, 1]} : vector<16x256xf32> to vector<2x256xf32>
    %cst_21 = arith.constant dense<0.000000e+00> : vector<2x256xf32>
    %124 = tpu.matmul %122, %12, %cst_21 {dimension_numbers = #tpu.dot_dimension_numbers<[1], [0], [0], [1], [0, 0, 1, 1], [], []>} : vector<2x64xf32>, vector<64x256xf32>, vector<2x256xf32> -> vector<2x256xf32>
    %125 = arith.addf %123, %124 : vector<2x256xf32>
    %126 = arith.negf %125 : vector<2x256xf32>
    %127 = math.exp %126 : vector<2x256xf32>
    %cst_22 = arith.constant 1.000000e+00 : f32
    %128 = vector.broadcast %cst_22 : f32 to vector<2x256xf32>
    %129 = arith.addf %128, %127 : vector<2x256xf32>
    %130 = arith.divf %128, %129 : vector<2x256xf32>
    %131 = math.tanh %125 : vector<2x256xf32>
    %132 = vector.extract_strided_slice %130 {offsets = [0, 0], sizes = [2, 64], strides = [1, 1]} : vector<2x256xf32> to vector<2x64xf32>
    %133 = vector.extract_strided_slice %130 {offsets = [0, 64], sizes = [2, 64], strides = [1, 1]} : vector<2x256xf32> to vector<2x64xf32>
    %134 = vector.extract_strided_slice %131 {offsets = [0, 128], sizes = [2, 64], strides = [1, 1]} : vector<2x256xf32> to vector<2x64xf32>
    %135 = vector.extract_strided_slice %130 {offsets = [0, 192], sizes = [2, 64], strides = [1, 1]} : vector<2x256xf32> to vector<2x64xf32>
    %136 = arith.mulf %133, %120 : vector<2x64xf32>
    %137 = arith.mulf %132, %134 : vector<2x64xf32>
    %138 = arith.addf %136, %137 : vector<2x64xf32>
    %139 = math.tanh %138 : vector<2x64xf32>
    %140 = arith.mulf %135, %139 : vector<2x64xf32>
    %141 = vector.extract_strided_slice %11 {offsets = [14, 0], sizes = [2, 256], strides = [1, 1]} : vector<16x256xf32> to vector<2x256xf32>
    %cst_23 = arith.constant dense<0.000000e+00> : vector<2x256xf32>
    %142 = tpu.matmul %140, %12, %cst_23 {dimension_numbers = #tpu.dot_dimension_numbers<[1], [0], [0], [1], [0, 0, 1, 1], [], []>} : vector<2x64xf32>, vector<64x256xf32>, vector<2x256xf32> -> vector<2x256xf32>
    %143 = arith.addf %141, %142 : vector<2x256xf32>
    %144 = arith.negf %143 : vector<2x256xf32>
    %145 = math.exp %144 : vector<2x256xf32>
    %cst_24 = arith.constant 1.000000e+00 : f32
    %146 = vector.broadcast %cst_24 : f32 to vector<2x256xf32>
    %147 = arith.addf %146, %145 : vector<2x256xf32>
    %148 = arith.divf %146, %147 : vector<2x256xf32>
    %149 = math.tanh %143 : vector<2x256xf32>
    %150 = vector.extract_strided_slice %148 {offsets = [0, 0], sizes = [2, 64], strides = [1, 1]} : vector<2x256xf32> to vector<2x64xf32>
    %151 = vector.extract_strided_slice %148 {offsets = [0, 64], sizes = [2, 64], strides = [1, 1]} : vector<2x256xf32> to vector<2x64xf32>
    %152 = vector.extract_strided_slice %149 {offsets = [0, 128], sizes = [2, 64], strides = [1, 1]} : vector<2x256xf32> to vector<2x64xf32>
    %153 = vector.extract_strided_slice %148 {offsets = [0, 192], sizes = [2, 64], strides = [1, 1]} : vector<2x256xf32> to vector<2x64xf32>
    %154 = arith.mulf %151, %138 : vector<2x64xf32>
    %155 = arith.mulf %150, %152 : vector<2x64xf32>
    %156 = arith.addf %154, %155 : vector<2x64xf32>
    %157 = math.tanh %156 : vector<2x64xf32>
    %158 = arith.mulf %153, %157 : vector<2x64xf32>
    %159 = tpu.iota {dimensions = array<i32: 1>} : vector<2x64xi32>
    %c32_i32 = arith.constant 32 : i32
    %160 = vector.broadcast %c32_i32 : i32 to vector<2x64xi32>
    %161 = arith.cmpi slt, %159, %160 : vector<2x64xi32>
    %162 = arith.select %161, %32, %158 : vector<2x64xi1>, vector<2x64xf32>
    %163 = arith.select %161, %50, %140 : vector<2x64xi1>, vector<2x64xf32>
    %164 = arith.select %161, %68, %122 : vector<2x64xi1>, vector<2x64xf32>
    %165 = arith.select %161, %86, %104 : vector<2x64xi1>, vector<2x64xf32>
    %166 = arith.select %161, %104, %86 : vector<2x64xi1>, vector<2x64xf32>
    %167 = arith.select %161, %122, %68 : vector<2x64xi1>, vector<2x64xf32>
    %168 = arith.select %161, %140, %50 : vector<2x64xi1>, vector<2x64xf32>
    %169 = arith.select %161, %158, %32 : vector<2x64xi1>, vector<2x64xf32>
    %170 = tpu.concatenate %162, %163, %164, %165, %166, %167, %168, %169 in 1 : vector<2x64xf32>, vector<2x64xf32>, vector<2x64xf32>, vector<2x64xf32>, vector<2x64xf32>, vector<2x64xf32>, vector<2x64xf32>, vector<2x64xf32> -> vector<2x512xf32>
    %c0_25 = arith.constant 0 : index
    %c0_26 = arith.constant 0 : index
    %171 = vector.load %arg4[%c0_25, %c0_26] : memref<2x512xf32, #tpu.memory_space<vmem>>, vector<2x512xf32>
    tpu.vector_store %arg4[%c0_25, %c0_26], %170 {strides = array<i32>} : memref<2x512xf32, #tpu.memory_space<vmem>>, vector<2x512xf32>,
    %172 = vector.extract_strided_slice %158 {offsets = [0, 0], sizes = [2, 32], strides = [1, 1]} : vector<2x64xf32> to vector<2x32xf32>
    %c0_27 = arith.constant 0 : index
    %c0_28 = arith.constant 0 : index
    %c0_29 = arith.constant 0 : index
    %173 = vector.load %arg5[%c0_27, %c0_28, %c0_29] : memref<2x2x32xf32, #tpu.memory_space<vmem>>, vector<1x2x32xf32>
    %174 = vector.shape_cast %173 : vector<1x2x32xf32> to vector<2x32xf32>
    %175 = vector.shape_cast %172 : vector<2x32xf32> to vector<1x2x32xf32>
    tpu.vector_store %arg5[%c0_27, %c0_28, %c0_29], %175 {strides = array<i32>} : memref<2x2x32xf32, #tpu.memory_space<vmem>>, vector<1x2x32xf32>,
    %176 = vector.extract_strided_slice %158 {offsets = [0, 32], sizes = [2, 32], strides = [1, 1]} : vector<2x64xf32> to vector<2x32xf32>
    %c1 = arith.constant 1 : index
    %c0_30 = arith.constant 0 : index
    %c0_31 = arith.constant 0 : index
    %177 = vector.load %arg5[%c1, %c0_30, %c0_31] : memref<2x2x32xf32, #tpu.memory_space<vmem>>, vector<1x2x32xf32>
    %178 = vector.shape_cast %177 : vector<1x2x32xf32> to vector<2x32xf32>
    %179 = vector.shape_cast %176 : vector<2x32xf32> to vector<1x2x32xf32>
    tpu.vector_store %arg5[%c1, %c0_30, %c0_31], %179 {strides = array<i32>} : memref<2x2x32xf32, #tpu.memory_space<vmem>>, vector<1x2x32xf32>,
    %180 = vector.extract_strided_slice %156 {offsets = [0, 0], sizes = [2, 32], strides = [1, 1]} : vector<2x64xf32> to vector<2x32xf32>
    %c0_32 = arith.constant 0 : index
    %c0_33 = arith.constant 0 : index
    %c0_34 = arith.constant 0 : index
    %181 = vector.load %arg6[%c0_32, %c0_33, %c0_34] : memref<2x2x32xf32, #tpu.memory_space<vmem>>, vector<1x2x32xf32>
    %182 = vector.shape_cast %181 : vector<1x2x32xf32> to vector<2x32xf32>
    %183 = vector.shape_cast %180 : vector<2x32xf32> to vector<1x2x32xf32>
    tpu.vector_store %arg6[%c0_32, %c0_33, %c0_34], %183 {strides = array<i32>} : memref<2x2x32xf32, #tpu.memory_space<vmem>>, vector<1x2x32xf32>,
    %184 = vector.extract_strided_slice %156 {offsets = [0, 32], sizes = [2, 32], strides = [1, 1]} : vector<2x64xf32> to vector<2x32xf32>
    %c1_35 = arith.constant 1 : index
    %c0_36 = arith.constant 0 : index
    %c0_37 = arith.constant 0 : index
    %185 = vector.load %arg6[%c1_35, %c0_36, %c0_37] : memref<2x2x32xf32, #tpu.memory_space<vmem>>, vector<1x2x32xf32>
    %186 = vector.shape_cast %185 : vector<1x2x32xf32> to vector<2x32xf32>
    %187 = vector.shape_cast %184 : vector<2x32xf32> to vector<1x2x32xf32>
    tpu.vector_store %arg6[%c1_35, %c0_36, %c0_37], %187 {strides = array<i32>} : memref<2x2x32xf32, #tpu.memory_space<vmem>>, vector<1x2x32xf32>,
    return
  }
}

</mosaic_0001>

<bundles_post_ra>
// kernel: encoder_forward.1
= control target key start
LH: loop header
LB: loop body
LE: loop exit
PB: predicated region body
PF: predicated region fallthrough
CT: control target
= control target key end

     0   :  { %12 = vsyncpa [#allocation3], 0  ;;  %s1911_s0 = inlined_call_operand.vmem [shape: s32[16,1], index: 0, kind: input, shape index: {}]   ;;  %s1912_s1 = inlined_call_operand.vmem [shape: s32[16,1], index: 1, kind: input, shape index: {}]   ;;  %s1913_s2 = inlined_call_operand.hbm [shape: f32[128,256], index: 2, kind: input, shape index: {}]   ;;  %s1914_s3 = inlined_call_operand.hbm [shape: f32[64,256], index: 3, kind: input, shape index: {}]   ;;  %s1915_s4 = inlined_call_operand.vmem [shape: f32[2,512], index: 4, kind: output, shape index: {0}]   ;;  %s1916_s5 = inlined_call_operand.hbm [shape: f32[2,2,32], index: 5, kind: output, shape index: {1}]   ;;  %s1917_s6 = inlined_call_operand.hbm [shape: f32[2,2,32], index: 6, kind: output, shape index: {2}]  }
   0x1   :  { %13 = vsyncpa [#allocation6], 0 }
   0x2   :  { %14 = vsyncpa [#allocation4], 0 }
   0x3   :  { %15 = vsyncpa [#allocation9], 0  ;;  %s1580_s21 = smov [#allocation2]   ;;  %s1484_s25 = scalar_lea.hbm %s1913_s2, 4096 }
   0x4   :  { %s25_s22 = sshll.u32 %s1580_s21, 4  ;;  %p1485_p0 = scmp.ne.s32.totalorder %s1913_s2, %s1484_s25  ;;  %s26_s22 = int_to_ptr.vmem [resolvable:$true] %s25_s22 }
   0x5   :  { %p1488_p1 = scmp.lt.u32.totalorder %s1484_s25, %s1913_s2 }
   0x7   :  { %p1490_p2 = pnand %p1488_p1, %p1485_p0 }
   0x9   :  { %1493 = shalt.err (!%p1490_p2)
}
   0xa   :  { %s1494_s30 = scalar_lea.vmem %s26_s22, 4096  ;;  %p1499_p4 = scmp.lt.s32.totalorder %s26_s22, %s26_s22 }
   0xb   :  { %p1495_p3 = scmp.ne.s32.totalorder %s26_s22, %s1494_s30  ;;  %p1500_p5 = scmp.lt.s32.totalorder %s1494_s30, %s1494_s30 }
   0xd   :  { %p1501_p6 = por %p1500_p5, %p1499_p4 }
   0xf   :  { %p1502_p7 = pnand %p1501_p6, %p1495_p3 }
  0x11   :  { %1505 = shalt.err (!%p1502_p7)
}
  0x12   :  { %s1581_s7 = smov 256   ;;  %s1582_s8 = smov 16  }
  0x13   :  { %31 = dma.hbm_to_vmem [thread:$0]  %s1913_s2, 4096, %s26_s22, [#allocation3], %s1581_s7, %s1581_s7, %s1582_s8  }
  0x14   :  { %s1583_s11 = smov [#allocation5]   ;;  %s1506_s15 = scalar_lea.hbm %s1914_s3, 2048 }
  0x15   :  { %s37_s12 = sshll.u32 %s1583_s11, 4  ;;  %p1507_p8 = scmp.ne.s32.totalorder %s1914_s3, %s1506_s15  ;;  %s38_s12 = int_to_ptr.vmem [resolvable:$true] %s37_s12 }
  0x16   :  { %p1510_p9 = scmp.lt.u32.totalorder %s1506_s15, %s1914_s3 }
  0x18   :  { %p1512_p10 = pnand %p1510_p9, %p1507_p8 }
  0x1a   :  { %1515 = shalt.err (!%p1512_p10)
}
  0x1b   :  { %s1516_s20 = scalar_lea.vmem %s38_s12, 2048  ;;  %p1521_p12 = scmp.lt.s32.totalorder %s38_s12, %s38_s12 }
  0x1c   :  { %p1517_p11 = scmp.ne.s32.totalorder %s38_s12, %s1516_s20  ;;  %p1522_p13 = scmp.lt.s32.totalorder %s1516_s20, %s1516_s20 }
  0x1e   :  { %p1523_p0 = por %p1522_p13, %p1521_p12 }
  0x20   :  { %p1524_p1 = pnand %p1523_p0, %p1517_p11 }
  0x22   :  { %1527 = shalt.err (!%p1524_p1)
}
  0x23   :  { %43 = dma.hbm_to_vmem [thread:$0]  %s1914_s3, 2048, %s38_s12, [#allocation6], %s1581_s7, %s1581_s7, %s1582_s8  }
  0x24   :  { %1572 = dma.done.wait [#allocation3], 4096  }
  0x25   :  { %1573 = vsyncadd [#allocation3], 4294963200 }
  0x26   :  { %1574 = dma.done.wait [#allocation6], 2048  }
  0x27   :  { %1575 = vsyncadd [#allocation6], 4294965248  ;;  %v1584_v0 = vmov 0   ;;  %v52_v1 = vld [vmem:[%s1911_s0] sm:$0xff]  ;;  %v79_v3 = vld [vmem:[#allocation2 + $0x8] sm:$0xff]  ;;  %v1585_v23 = vmov 0.0  }
  0x28   :  { %1386 = vset.pattern.permute.xlu0 %v1584_v0  ;;  %1387 = vset.pattern.permute.xlu1 %v1584_v0  ;;  %v62_v2 = vld [vmem:[%s1912_s1] sm:$0xff]  ;;  %v81_v4 = vld [vmem:[#allocation2 + $0x18] sm:$0xff]  ;;  %v80_v6 = vld [vmem:[#allocation2 + $0x10] sm:$0xff]  ;;  %s1587_s3 = smov 64   ;;  %vm203_vm3 = vcmask 523264   ;;  %vm1131_vm8 = vcmask 261126  }
  0x29   :  { %55 = vperm.xlu0 %1386, %v52_v1   ;;  %v78_v5 = vld [vmem:[#allocation2] sm:$0xff]  ;;  %v1213_v7 = vpack.c.bf16 %v81_v4, %v79_v3  ;;  %v83_v9 = vld [vmem:[#allocation2 + $0x28] sm:$0xff]  ;;  %v85_v10 = vld [vmem:[#allocation2 + $0x38] sm:$0xff]  ;;  %271 = vmatprep.mubr.f32.mxu1 %v1585_v23  ;;  %s1590_s29 = smov [#allocation7]   ;;  %s1591_s7 = smov [#allocation8]  }
  0x2a   :  { %v1215_v8 = vpack.c.bf16 %v80_v6, %v78_v5  ;;  %v82_v11 = vld [vmem:[#allocation2 + $0x20] sm:$0xff]  ;;  %v1217_v12 = vpack.c.bf16 %v85_v10, %v83_v9  ;;  %v84_v13 = vld [vmem:[#allocation2 + $0x30] sm:$0xff]  ;;  %v87_v14 = vld [vmem:[#allocation2 + $0x48] sm:$0xff]  ;;  %174 = vmatprep.mubr.f32.mxu0 %v1585_v23  ;;  %s1155_s30 = sshll.u32 %s1590_s29, 4  ;;  %s1167_s8 = sshll.u32 %s1591_s7, 4  ;;  %s1156_s30 = int_to_ptr.vmem [resolvable:$true] %s1155_s30  ;;  %s1168_s8 = int_to_ptr.vmem [resolvable:$true] %s1167_s8 }
  0x2b   :  { %v89_v15 = vld [vmem:[#allocation2 + $0x58] sm:$0xff]  ;;  %1214 = vmatprep.subr.bf16.mxu0 %v1213_v7  ;;  %v1219_v16 = vpack.c.bf16 %v84_v13, %v82_v11  ;;  %v86_v17 = vld [vmem:[#allocation2 + $0x40] sm:$0xff]  ;;  %v88_v18 = vld [vmem:[#allocation2 + $0x50] sm:$0xff]  ;;  %s1528_s9 = scalar_lea.vmem %s1156_s30, 64  ;;  %p1533_p3 = scmp.lt.s32.totalorder %s1156_s30, %s1156_s30 }
  0x2c   :  { %1216 = vmatpush1.bf16.msra.mxu0 %v1215_v8  ;;  %v1221_v19 = vpack.c.bf16 %v89_v15, %v87_v14  ;;  %v91_v20 = vld [vmem:[#allocation2 + $0x68] sm:$0xff]  ;;  %v190_v22 = vld [vmem:[#allocation5 + $0x18] sm:$0xff]  ;;  %v187_v26 = vld [vmem:[#allocation5] sm:$0xff]  ;;  %v1223_v30 = vpack.c.bf16 %v88_v18, %v86_v17  ;;  %p1529_p2 = scmp.ne.s32.totalorder %s1156_s30, %s1528_s9  ;;  %p1534_p4 = scmp.lt.s32.totalorder %s1528_s9, %s1528_s9 }
  0x2d   :  { %65 = vperm.xlu0 %1386, %v62_v2   ;;  %1218 = vmatprep.subr.bf16.mxu0 %v1217_v12  ;;  %v188_v21 = vld [vmem:[#allocation5 + $0x8] sm:$0xff]  ;;  %v93_v24 = vld [vmem:[#allocation2 + $0x78] sm:$0xff]  ;;  %v189_v27 = vld [vmem:[#allocation5 + $0x10] sm:$0xff]  ;;  %v50_v12 = vlaneseq }
  0x2e   :  { %v1659_v25 = vpack.c.bf16 %v190_v22, %v188_v21  ;;  %v1662_v28 = vpack.c.bf16 %v189_v27, %v187_v26  ;;  %v192_v29 = vld [vmem:[#allocation5 + $0x28] sm:$0xff]  ;;  %v90_v31 = vld [vmem:[#allocation2 + $0x60] sm:$0xff]  ;;  %v92_v32 = vld [vmem:[#allocation2 + $0x70] sm:$0xff]  ;;  %v1225_v34 = vpack.c.bf16 %v93_v24, %v91_v20  ;;  %p1535_p5 = por %p1534_p4, %p1533_p3 }
  0x2f   :  { %v194_v33 = vld [vmem:[#allocation5 + $0x38] sm:$0xff]  ;;  %v95_v35 = vld [vmem:[#allocation2 + $0x88] sm:$0xff]  ;;  %v191_v37 = vld [vmem:[#allocation5 + $0x20] sm:$0xff]  ;;  %v1227_v45 = vpack.c.bf16 %v92_v32, %v90_v31  ;;  %v1697_v14 = vand.u32 127, %v50_v12 }
  0x30   :  { %1220 = vmatpush1.bf16.msra.mxu0 %v1219_v16  ;;  %1246 = vmatprep.subr.bf16.mxu1 %v1659_v25  ;;  %v1666_v36 = vpack.c.bf16 %v194_v33, %v192_v29  ;;  %v193_v38 = vld [vmem:[#allocation5 + $0x30] sm:$0xff]  ;;  %v97_v39 = vld [vmem:[#allocation2 + $0x98] sm:$0xff]  ;;  %v196_v41 = vld [vmem:[#allocation5 + $0x48] sm:$0xff]  ;;  %v1586_v16 = vmov 1.0   ;;  %p1536_p6 = pnand %p1535_p5, %p1529_p2 }
  0x31   :  { %1222 = vmatprep.subr.bf16.mxu0 %v1221_v19  ;;  %1248 = vmatpush1.bf16.msra.mxu1 %v1662_v28  ;;  %v1668_v40 = vpack.c.bf16 %v193_v38, %v191_v37  ;;  %v198_v42 = vld [vmem:[#allocation5 + $0x58] sm:$0xff]  ;;  %v195_v44 = vld [vmem:[#allocation5 + $0x40] sm:$0xff]  ;;  %v96_v47 = vld [vmem:[#allocation2 + $0x90] sm:$0xff]  ;;  %v1229_v49 = vpack.c.bf16 %v97_v39, %v95_v35  ;;  %vm1064_vm7 = vcmp.lt.s32.totalorder %v1697_v14, 32 }
  0x32   :  { %1250 = vmatprep.subr.bf16.mxu1 %v1666_v36  ;;  %v1671_v43 = vpack.c.bf16 %v198_v42, %v196_v41  ;;  %v94_v46 = vld [vmem:[#allocation2 + $0x80] sm:$0xff]  ;;  %v197_v48 = vld [vmem:[#allocation5 + $0x50] sm:$0xff]  ;;  %v99_v50 = vld [vmem:[#allocation2 + $0xa8] sm:$0xff] }
  0x33   :  { %v1674_v51 = vpack.c.bf16 %v197_v48, %v195_v44  ;;  %v200_v52 = vld [vmem:[#allocation5 + $0x68] sm:$0xff]  ;;  %v202_v53 = vld [vmem:[#allocation5 + $0x78] sm:$0xff]  ;;  %v199_v56 = vld [vmem:[#allocation5 + $0x60] sm:$0xff]  ;;  %v1231_v58 = vpack.c.bf16 %v96_v47, %v94_v46 }
  0x34   :  { %1224 = vmatpush1.bf16.msra.mxu0 %v1223_v30  ;;  %v101_v54 = vld [vmem:[#allocation2 + $0xb8] sm:$0xff]  ;;  %v1677_v55 = vpack.c.bf16 %v202_v53, %v200_v52  ;;  %v201_v57 = vld [vmem:[#allocation5 + $0x70] sm:$0xff]  ;;  %v98_v60 = vld [vmem:[#allocation2 + $0xa0] sm:$0xff] }
  0x35   :  { %1226 = vmatprep.subr.bf16.mxu0 %v1225_v34  ;;  %1252 = vmatpush1.bf16.msra.mxu1 %v1668_v40  ;;  %v1233_v59 = vpack.c.bf16 %v101_v54, %v99_v50  ;;  %v100_v61 = vld [vmem:[#allocation2 + $0xb0] sm:$0xff]  ;;  %v1680_v62 = vpack.c.bf16 %v201_v57, %v199_v56  ;;  %v103_v63 = vld [vmem:[#allocation2 + $0xc8] sm:$0xff]  ;;  %v105_v0 = vld [vmem:[#allocation2 + $0xd8] sm:$0xff] }
  0x36   :  { %1254 = vmatprep.subr.bf16.mxu1 %v1671_v43  ;;  %v1235_v1 = vpack.c.bf16 %v100_v61, %v98_v60  ;;  %v1237_v2 = vpack.c.bf16 %v105_v0, %v103_v63  ;;  %v102_v3 = vld [vmem:[#allocation2 + $0xc0] sm:$0xff]  ;;  %v104_v4 = vld [vmem:[#allocation2 + $0xd0] sm:$0xff]  ;;  %v107_v5 = vld [vmem:[#allocation2 + $0xe8] sm:$0xff] }
  0x37   :  { %v109_v6 = vld [vmem:[#allocation2 + $0xf8] sm:$0xff]  ;;  %v1239_v7 = vpack.c.bf16 %v104_v4, %v102_v3  ;;  %v106_v9 = vld [vmem:[#allocation2 + $0xe0] sm:$0xff]  ;;  %v108_v10 = vld [vmem:[#allocation2 + $0xf0] sm:$0xff] }
  0x38   :  { %1228 = vmatpush1.bf16.msra.mxu0 %v1227_v45  ;;  %v1241_v8 = vpack.c.bf16 %v109_v6, %v107_v5  ;;  %v1243_v11 = vpack.c.bf16 %v108_v10, %v106_v9  ;;  %v53_v45 = vld [vmem:[%s1911_s0 + $0x8] sm:$0xff] }
  0x39   :  { %1230 = vmatprep.subr.bf16.mxu0 %v1229_v49  ;;  %1256 = vmatpush1.bf16.msra.mxu1 %v1674_v51  ;;  %v63_v63 = vld [vmem:[%s1912_s1 + $0x8] sm:$0xff]  ;;  %s1588_s1 = smov 32  }
  0x3a   :  { %1258 = vmatprep.subr.bf16.mxu1 %v1677_v55 }
  0x3c   :  { %1232 = vmatpush1.bf16.msra.mxu0 %v1231_v58 }
  0x3d   :  { %1234 = vmatprep.subr.bf16.mxu0 %v1233_v59  ;;  %1260 = vmatpush1.bf16.msra.mxu1 %v1680_v62 }
  0x3e   :  { %1262 = vmatprep.subr.bf16.mxu1 %v1659_v25 }
  0x40   :  { %1236 = vmatpush1.bf16.msra.mxu0 %v1235_v1  ;;  %272 = vmatmul.mubr.f32.vlgmr.msra.gmra.mrb[0].mxu1 %v1585_v23 }
  0x41   :  { %1238 = vmatprep.subr.bf16.mxu0 %v1237_v2  ;;  %1264 = vmatpush1.bf16.msra.mxu1 %v1662_v28 }
  0x42   :  { %1266 = vmatprep.subr.bf16.mxu1 %v1666_v36  ;;  %371 = vmatprep.mubr.f32.mxu1 %v1585_v23 }
  0x44   :  { %1240 = vmatpush1.bf16.msra.mxu0 %v1239_v7 }
  0x45   :  { %1242 = vmatprep.subr.bf16.mxu0 %v1241_v8  ;;  %1268 = vmatpush1.bf16.msra.mxu1 %v1668_v40 }
  0x46   :  { %1270 = vmatprep.subr.bf16.mxu1 %v1671_v43 }
  0x48   :  { %1244 = vmatpush1.bf16.msra.mxu0 %v1243_v11 }
  0x49   :  { %1272 = vmatpush1.bf16.msra.mxu1 %v1674_v51  ;;  %1278 = vmatprep.subr.bf16.mxu0 %v1659_v25 }
  0x4a   :  { %1274 = vmatprep.subr.bf16.mxu1 %v1677_v55 }
  0x4d   :  { %1276 = vmatpush1.bf16.msra.mxu1 %v1680_v62 }
  0x4e   :  { %1294 = vmatprep.subr.bf16.mxu1 %v1659_v25 }
  0xa8   :  { %v56_v13 = vpop.permute.xlu0 %55 }
  0xa9   :  { %vm60_vm0 = vcmp.eq.s32.totalorder %v1697_v14, %v56_v13 }
  0xac   :  { %v66_v15 = vpop.permute.xlu0 %65 }
  0xad   :  { %vm70_vm1 = vcmp.eq.s32.totalorder %v1697_v14, %v66_v15 }
  0xae   :  { %vm72_vm2 = vmor %vm60_vm0, %vm70_vm1 }
  0xaf   :  { %1188 = vmatmul.mubr.msk.f32.vlgmr.msra.gmra.mrb[0].mxu0 %vm72_vm2, %v1586_v16 }
  0xb0   :  { %180 = vmatprep.mubr.f32.mxu0 %v1585_v23  ;;  %1280 = vmatpush1.bf16.msra.mxu0 %v1662_v28 }
  0xb1   :  { %1282 = vmatprep.subr.bf16.mxu0 %v1666_v36 }
  0xb4   :  { %1284 = vmatpush1.bf16.msra.mxu0 %v1668_v40 }
  0xb5   :  { %1286 = vmatprep.subr.bf16.mxu0 %v1671_v43 }
  0xb8   :  { %1288 = vmatpush1.bf16.msra.mxu0 %v1674_v51 }
  0xb9   :  { %1290 = vmatprep.subr.bf16.mxu0 %v1677_v55 }
  0xbc   :  { %1292 = vmatpush1.bf16.msra.mxu0 %v1680_v62 }
  0xbd   :  { %1310 = vmatprep.subr.bf16.mxu0 %v1659_v25 }
 0x113   :  { %v273_v17 = vpop.f32.mrb[0].mxu1 }
 0x114   :  { %v275_v18 = vpop.f32.mrb[1].mxu1 }
 0x182   :  { %v1711_v19 = vpop.f32.mrb[0].mxu0 }
 0x183   :  { %v278_v20 = vadd.f32 %v273_v17, %v1711_v19  ;;  %v1714_v21 = vpop.f32.mrb[1].mxu0 }
 0x184   :  { %v279_v22 = vadd.f32 %v275_v18, %v1714_v21 }
 0x185   :  { %v1190_v24 = vmul.f32 -1.442695, %v278_v20 }
 0x186   :  { %v1191_v32 = vmul.f32 -1.442695, %v279_v22 }
 0x187   :  { %1388 = vpow2.f32 %v1190_v24 }
 0x188   :  { %1390 = vtanh.f32 %v279_v22 }
 0x191   :  { %v1389_v26 = vpop.eup %1388 }
 0x192   :  { %v286_v27 = vadd.f32 1.0, %v1389_v26  ;;  %v1391_v29 = vpop.eup %1390 }
 0x194   :  { %1392 = vrcp.f32 %v286_v27 }
 0x195   :  { %1394 = vpow2.f32 %v1191_v32 }
 0x19e   :  { %v1393_v30 = vpop.eup %1392 }
 0x19f   :  { %v294_v31 = vmul.f32 %v1393_v30, %v1391_v29  ;;  %v1395_v33 = vpop.eup %1394  ;;  %v293_v35 = vmul.f32 0.0, %v1393_v30 }
 0x1a0   :  { %v287_v34 = vadd.f32 1.0, %v1395_v33 }
 0x1a1   :  { %296 = vrot.lane.b32.xlu1 %v294_v31, %s1587_s3 }
 0x1a2   :  { %1396 = vrcp.f32 %v287_v34 }
 0x1ac   :  { %v1397_v39 = vpop.eup %1396 }
 0x213   :  { %v297_v37 = vpop.permute.xlu1 %296 }
 0x214   :  { %v299_v38 = vadd.f32 %v297_v37, %v293_v35 }
 0x216   :  { %1398 = vtanh.f32 %v299_v38  ;;  %v400_v58 = vrot.slane %v299_v38, 6 }
 0x220   :  { %v1399_v41 = vpop.eup %1398 }
 0x221   :  { %v301_v42 = vmul.f32 %v1399_v41, %v1397_v39 }
 0x223   :  { %303 = vrot.lane.b32.xlu1 %v301_v42, %s1587_s3 }
 0x227   :  { %58 = vperm.xlu1 %1387, %v53_v45  }
 0x295   :  { %v1719_v44 = vpop.permute.xlu1 %303 }
 0x296   :  { %1192 = vmatmul.mubr.msk.f32.vlgmr.msra.gmra.mrb[2].mxu1 %vm203_vm3, %v1719_v44 }
 0x297   :  { %1296 = vmatpush1.bf16.msra.mxu1 %v1662_v28  ;;  %591 = vmatprep.mubr.f32.mxu1 %v1585_v23 }
 0x298   :  { %1298 = vmatprep.subr.bf16.mxu1 %v1666_v36 }
 0x29b   :  { %1300 = vmatpush1.bf16.msra.mxu1 %v1668_v40 }
 0x29c   :  { %1302 = vmatprep.subr.bf16.mxu1 %v1671_v43 }
 0x29f   :  { %1304 = vmatpush1.bf16.msra.mxu1 %v1674_v51 }
 0x2a0   :  { %1306 = vmatprep.subr.bf16.mxu1 %v1677_v55 }
 0x2a3   :  { %1308 = vmatpush1.bf16.msra.mxu1 %v1680_v62 }
 0x2a4   :  { %1326 = vmatprep.subr.bf16.mxu1 %v1659_v25 }
 0x2a6   :  { %v59_v7 = vpop.permute.xlu1 %58 }
 0x2a7   :  { %vm61_vm4 = vcmp.eq.s32.totalorder %v1697_v14, %v59_v7 }
 0x369   :  { %v373_v46 = vpop.f32.mrb[2].mxu1 }
 0x36a   :  { %v380_v47 = vrot.slane %v373_v46, 6  ;;  %v375_v48 = vpop.f32.mrb[3].mxu1 }
 0x36b   :  { %v381_v49 = vrot.slane %v375_v48, 6 }
 0x36c   :  { %v384_v50 = vadd.f32 %v380_v47, %v1711_v19 }
 0x36d   :  { %v385_v52 = vadd.f32 %v381_v49, %v1714_v21 }
 0x36e   :  { %v1193_v53 = vmul.f32 -1.442695, %v384_v50 }
 0x36f   :  { %v1194_v0 = vmul.f32 -1.442695, %v385_v52 }
 0x370   :  { %1400 = vpow2.f32 %v1193_v53 }
 0x371   :  { %1402 = vtanh.f32 %v385_v52 }
 0x37a   :  { %v1401_v54 = vpop.eup %1400 }
 0x37b   :  { %v392_v56 = vadd.f32 1.0, %v1401_v54  ;;  %v1403_v57 = vpop.eup %1402 }
 0x37d   :  { %1404 = vrcp.f32 %v392_v56 }
 0x37e   :  { %1406 = vpow2.f32 %v1194_v0 }
 0x387   :  { %v1405_v59 = vpop.eup %1404 }
 0x388   :  { %v403_v60 = vmul.f32 %v1405_v59, %v1403_v57  ;;  %v402_v61 = vmul.f32 %v1405_v59, %v400_v58  ;;  %v1407_v1 = vpop.eup %1406 }
 0x389   :  { %v393_v2 = vadd.f32 1.0, %v1407_v1 }
 0x38a   :  { %405 = vrot.lane.b32.xlu0 %v403_v60, %s1587_s3 }
 0x38b   :  { %1408 = vrcp.f32 %v393_v2 }
 0x38e   :  { %68 = vperm.xlu0 %1386, %v63_v63  }
 0x395   :  { %v1409_v5 = vpop.eup %1408 }
 0x3fc   :  { %v406_v3 = vpop.permute.xlu0 %405 }
 0x3fd   :  { %v408_v4 = vadd.f32 %v406_v3, %v402_v61 }
 0x3ff   :  { %1410 = vtanh.f32 %v408_v4  ;;  %v510_v31 = vrot.slane %v408_v4, 6 }
 0x409   :  { %v1411_v6 = vpop.eup %1410 }
 0x40a   :  { %v410_v8 = vmul.f32 %v1411_v6, %v1409_v5 }
 0x40c   :  { %v412_v9 = vrot.slane %v410_v8, 2 }
 0x40d   :  { %v69_v10 = vpop.permute.xlu0 %68 }
 0x40e   :  { %vm71_vm5 = vcmp.eq.s32.totalorder %v1697_v14, %v69_v10  ;;  %413 = vrot.lane.b32.xlu1 %v412_v9, %s1587_s3 }
 0x40f   :  { %vm73_vm6 = vmor %vm61_vm4, %vm71_vm5 }
 0x410   :  { %1189 = vmatmul.mubr.msk.f32.gmra.mrb[2].mxu0 %vm73_vm6, %v1586_v16 }
 0x411   :  { %481 = vmatprep.mubr.f32.mxu0 %v1585_v23 }
 0x480   :  { %v1746_v11 = vpop.permute.xlu1 %413 }
 0x481   :  { %1195 = vmatmul.mubr.msk.f32.vlgmr.msra.gmra.mrb[4].mxu0 %vm203_vm3, %v1746_v11 }
 0x482   :  { %1312 = vmatpush1.bf16.msra.mxu0 %v1662_v28  ;;  %701 = vmatprep.mubr.f32.mxu0 %v1585_v23 }
 0x483   :  { %1314 = vmatprep.subr.bf16.mxu0 %v1666_v36 }
 0x486   :  { %1316 = vmatpush1.bf16.msra.mxu0 %v1668_v40 }
 0x487   :  { %1318 = vmatprep.subr.bf16.mxu0 %v1671_v43 }
 0x48a   :  { %1320 = vmatpush1.bf16.msra.mxu0 %v1674_v51 }
 0x48b   :  { %1322 = vmatprep.subr.bf16.mxu0 %v1677_v55 }
 0x48e   :  { %1324 = vmatpush1.bf16.msra.mxu0 %v1680_v62 }
 0x48f   :  { %1342 = vmatprep.subr.bf16.mxu0 %v1659_v25 }
 0x4e3   :  { %v1759_v13 = vpop.f32.mrb[2].mxu0 }
 0x4e4   :  { %v1761_v15 = vpop.f32.mrb[3].mxu0 }
 0x554   :  { %v483_v16 = vpop.f32.mrb[4].mxu0 }
 0x555   :  { %v490_v17 = vrot.slane %v483_v16, 4  ;;  %v485_v18 = vpop.f32.mrb[5].mxu0 }
 0x556   :  { %v491_v20 = vrot.slane %v485_v18, 4 }
 0x557   :  { %v494_v22 = vadd.f32 %v490_v17, %v1711_v19 }
 0x558   :  { %v495_v24 = vadd.f32 %v491_v20, %v1714_v21 }
 0x559   :  { %v1196_v26 = vmul.f32 -1.442695, %v494_v22 }
 0x55a   :  { %v1197_v35 = vmul.f32 -1.442695, %v495_v24 }
 0x55b   :  { %1412 = vpow2.f32 %v1196_v26 }
 0x55c   :  { %1414 = vtanh.f32 %v495_v24 }
 0x565   :  { %v1413_v27 = vpop.eup %1412 }
 0x566   :  { %v502_v29 = vadd.f32 1.0, %v1413_v27  ;;  %v1415_v30 = vpop.eup %1414 }
 0x568   :  { %1416 = vrcp.f32 %v502_v29 }
 0x569   :  { %1418 = vpow2.f32 %v1197_v35 }
 0x572   :  { %v1417_v32 = vpop.eup %1416 }
 0x573   :  { %v513_v33 = vmul.f32 %v1417_v32, %v1415_v30  ;;  %v512_v34 = vmul.f32 %v1417_v32, %v510_v31  ;;  %v1419_v37 = vpop.eup %1418 }
 0x574   :  { %v503_v38 = vadd.f32 1.0, %v1419_v37 }
 0x575   :  { %515 = vrot.lane.b32.xlu0 %v513_v33, %s1587_s3 }
 0x576   :  { %1420 = vrcp.f32 %v503_v38 }
 0x580   :  { %v1421_v42 = vpop.eup %1420 }
 0x5e7   :  { %v516_v39 = vpop.permute.xlu0 %515 }
 0x5e8   :  { %v518_v41 = vadd.f32 %v516_v39, %v512_v34 }
 0x5ea   :  { %1422 = vtanh.f32 %v518_v41  ;;  %v620_v61 = vrot.slane %v518_v41, 6 }
 0x5f4   :  { %v1423_v45 = vpop.eup %1422 }
 0x5f5   :  { %v520_v46 = vmul.f32 %v1423_v45, %v1421_v42 }
 0x5f7   :  { %v522_v47 = vrot.slane %v520_v46, 4 }
 0x5f9   :  { %523 = vrot.lane.b32.xlu1 %v522_v47, %s1587_s3 }
 0x66b   :  { %v1767_v48 = vpop.permute.xlu1 %523 }
 0x66c   :  { %1198 = vmatmul.mubr.msk.f32.vlgmr.msra.gmra.mrb[4].mxu1 %vm203_vm3, %v1767_v48 }
 0x66d   :  { %1328 = vmatpush1.bf16.msra.mxu1 %v1662_v28  ;;  %804 = vmatprep.mubr.f32.mxu1 %v1585_v23 }
 0x66e   :  { %1330 = vmatprep.subr.bf16.mxu1 %v1666_v36 }
 0x671   :  { %1332 = vmatpush1.bf16.msra.mxu1 %v1668_v40 }
 0x672   :  { %1334 = vmatprep.subr.bf16.mxu1 %v1671_v43 }
 0x675   :  { %1336 = vmatpush1.bf16.msra.mxu1 %v1674_v51 }
 0x676   :  { %1338 = vmatprep.subr.bf16.mxu1 %v1677_v55 }
 0x679   :  { %1340 = vmatpush1.bf16.msra.mxu1 %v1680_v62 }
 0x67a   :  { %1358 = vmatprep.subr.bf16.mxu1 %v1659_v25 }
 0x73f   :  { %v593_v49 = vpop.f32.mrb[4].mxu1 }
 0x740   :  { %v600_v50 = vrot.slane %v593_v49, 2  ;;  %v595_v52 = vpop.f32.mrb[5].mxu1 }
 0x741   :  { %v601_v53 = vrot.slane %v595_v52, 2 }
 0x742   :  { %v604_v54 = vadd.f32 %v600_v50, %v1711_v19 }
 0x743   :  { %v605_v56 = vadd.f32 %v601_v53, %v1714_v21 }
 0x744   :  { %v1199_v57 = vmul.f32 -1.442695, %v604_v54 }
 0x745   :  { %v1200_v25 = vmul.f32 -1.442695, %v605_v56 }
 0x746   :  { %1424 = vpow2.f32 %v1199_v57 }
 0x747   :  { %1426 = vtanh.f32 %v605_v56 }
 0x750   :  { %v1425_v58 = vpop.eup %1424 }
 0x751   :  { %v612_v59 = vadd.f32 1.0, %v1425_v58  ;;  %v1427_v60 = vpop.eup %1426 }
 0x753   :  { %1428 = vrcp.f32 %v612_v59 }
 0x754   :  { %1430 = vpow2.f32 %v1200_v25 }
 0x75d   :  { %v1429_v63 = vpop.eup %1428 }
 0x75e   :  { %v623_v0 = vmul.f32 %v1429_v63, %v1427_v60  ;;  %v622_v1 = vmul.f32 %v1429_v63, %v620_v61  ;;  %v1431_v2 = vpop.eup %1430 }
 0x75f   :  { %v613_v3 = vadd.f32 1.0, %v1431_v2 }
 0x760   :  { %625 = vrot.lane.b32.xlu0 %v623_v0, %s1587_s3 }
 0x761   :  { %1432 = vrcp.f32 %v613_v3 }
 0x76b   :  { %v1433_v21 = vpop.eup %1432 }
 0x7d2   :  { %v626_v19 = vpop.permute.xlu0 %625 }
 0x7d3   :  { %v628_v4 = vadd.f32 %v626_v19, %v622_v1 }
 0x7d5   :  { %1434 = vtanh.f32 %v628_v4  ;;  %v724_v26 = vrot.slane %v628_v4, 6 }
 0x7df   :  { %v1435_v5 = vpop.eup %1434 }
 0x7e0   :  { %v630_v6 = vmul.f32 %v1435_v5, %v1433_v21 }
 0x7e2   :  { %v632_v7 = vrot.slane %v630_v6, 6 }
 0x7e4   :  { %633 = vrot.lane.b32.xlu1 %v632_v7, %s1587_s3 }
 0x856   :  { %v1784_v8 = vpop.permute.xlu1 %633 }
 0x857   :  { %1201 = vmatmul.mubr.msk.f32.vlgmr.msra.gmra.mrb[6].mxu0 %vm203_vm3, %v1784_v8 }
 0x858   :  { %1344 = vmatpush1.bf16.msra.mxu0 %v1662_v28  ;;  %914 = vmatprep.mubr.f32.mxu0 %v1585_v23 }
 0x859   :  { %1346 = vmatprep.subr.bf16.mxu0 %v1666_v36 }
 0x85c   :  { %1348 = vmatpush1.bf16.msra.mxu0 %v1668_v40 }
 0x85d   :  { %1350 = vmatprep.subr.bf16.mxu0 %v1671_v43 }
 0x860   :  { %1352 = vmatpush1.bf16.msra.mxu0 %v1674_v51 }
 0x861   :  { %1354 = vmatprep.subr.bf16.mxu0 %v1677_v55 }
 0x864   :  { %1356 = vmatpush1.bf16.msra.mxu0 %v1680_v62 }
 0x92a   :  { %v703_v9 = vpop.f32.mrb[6].mxu0 }
 0x92b   :  { %v708_v10 = vadd.f32 %v703_v9, %v1759_v13  ;;  %v705_v16 = vpop.f32.mrb[7].mxu0 }
 0x92c   :  { %v709_v17 = vadd.f32 %v705_v16, %v1761_v15 }
 0x92d   :  { %v1202_v18 = vmul.f32 -1.442695, %v708_v10 }
 0x92e   :  { %v1203_v31 = vmul.f32 -1.442695, %v709_v17 }
 0x92f   :  { %1436 = vpow2.f32 %v1202_v18 }
 0x930   :  { %1438 = vtanh.f32 %v709_v17 }
 0x939   :  { %v1437_v20 = vpop.eup %1436 }
 0x93a   :  { %v716_v22 = vadd.f32 1.0, %v1437_v20  ;;  %v1439_v24 = vpop.eup %1438 }
 0x93c   :  { %1440 = vrcp.f32 %v716_v22 }
 0x93d   :  { %1442 = vpow2.f32 %v1203_v31 }
 0x946   :  { %v1441_v27 = vpop.eup %1440 }
 0x947   :  { %v727_v29 = vmul.f32 %v1441_v27, %v1439_v24  ;;  %v726_v30 = vmul.f32 %v1441_v27, %v724_v26  ;;  %v1443_v32 = vpop.eup %1442 }
 0x948   :  { %v717_v33 = vadd.f32 1.0, %v1443_v32 }
 0x949   :  { %729 = vrot.lane.b32.xlu0 %v727_v29, %s1587_s3 }
 0x94a   :  { %1444 = vrcp.f32 %v717_v33 }
 0x954   :  { %v1445_v37 = vpop.eup %1444 }
 0x9bb   :  { %v730_v34 = vpop.permute.xlu0 %729 }
 0x9bc   :  { %v732_v35 = vadd.f32 %v730_v34, %v726_v30 }
 0x9be   :  { %1446 = vtanh.f32 %v732_v35 }
 0x9c8   :  { %v1447_v38 = vpop.eup %1446 }
 0x9c9   :  { %v734_v39 = vmul.f32 %v1447_v38, %v1445_v37 }
 0x9cb   :  { %736 = vrot.lane.b32.xlu1 %v734_v39, %s1587_s3 }
 0xa3d   :  { %v1800_v41 = vpop.permute.xlu1 %736 }
 0xa3e   :  { %1204 = vmatmul.mubr.msk.f32.vlgmr.msra.gmra.mrb[6].mxu1 %vm203_vm3, %v1800_v41 }
 0xa3f   :  { %1360 = vmatpush1.bf16.msra.mxu1 %v1662_v28  ;;  %1024 = vmatprep.mubr.f32.mxu1 %v1585_v23 }
 0xa40   :  { %1362 = vmatprep.subr.bf16.mxu1 %v1666_v36 }
 0xa43   :  { %1364 = vmatpush1.bf16.msra.mxu1 %v1668_v40 }
 0xa44   :  { %1366 = vmatprep.subr.bf16.mxu1 %v1671_v43 }
 0xa47   :  { %1368 = vmatpush1.bf16.msra.mxu1 %v1674_v51  ;;  %v833_v51 = vrot.slane %v732_v35, 6 }
 0xa48   :  { %1370 = vmatprep.subr.bf16.mxu1 %v1677_v55 }
 0xa4b   :  { %1372 = vmatpush1.bf16.msra.mxu1 %v1680_v62 }
 0xb11   :  { %v806_v42 = vpop.f32.mrb[6].mxu1 }
 0xb12   :  { %v813_v45 = vrot.slane %v806_v42, 6  ;;  %v808_v46 = vpop.f32.mrb[7].mxu1 }
 0xb13   :  { %v814_v47 = vrot.slane %v808_v46, 6 }
 0xb14   :  { %v817_v28 = vadd.f32 %v813_v45, %v1759_v13 }
 0xb15   :  { %v818_v23 = vadd.f32 %v814_v47, %v1761_v15 }
 0xb16   :  { %v1205_v49 = vmul.f32 -1.442695, %v817_v28 }
 0xb17   :  { %v1206_v62 = vmul.f32 -1.442695, %v818_v23 }
 0xb18   :  { %1448 = vpow2.f32 %v1205_v49 }
 0xb19   :  { %1450 = vtanh.f32 %v818_v23 }
 0xb22   :  { %v1449_v36 = vpop.eup %1448 }
 0xb23   :  { %v825_v40 = vadd.f32 1.0, %v1449_v36  ;;  %v1451_v43 = vpop.eup %1450 }
 0xb25   :  { %1452 = vrcp.f32 %v825_v40 }
 0xb26   :  { %1454 = vpow2.f32 %v1206_v62 }
 0xb2f   :  { %v1453_v50 = vpop.eup %1452 }
 0xb30   :  { %v836_v55 = vmul.f32 %v1453_v50, %v1451_v43  ;;  %v835_v52 = vmul.f32 %v1453_v50, %v833_v51  ;;  %v1455_v53 = vpop.eup %1454 }
 0xb31   :  { %v826_v54 = vadd.f32 1.0, %v1455_v53 }
 0xb32   :  { %838 = vrot.lane.b32.xlu0 %v836_v55, %s1587_s3 }
 0xb33   :  { %1456 = vrcp.f32 %v826_v54  ;;  %v1080_v54 = vsel %vm1064_vm7, %v1784_v8, %v1800_v41 }
 0xb3d   :  { %v1457_v58 = vpop.eup %1456 }
 0xba4   :  { %v839_v56 = vpop.permute.xlu0 %838 }
 0xba5   :  { %v841_v57 = vadd.f32 %v839_v56, %v835_v52 }
 0xba7   :  { %1458 = vtanh.f32 %v841_v57  ;;  %v943_v7 = vrot.slane %v841_v57, 6 }
 0xbb1   :  { %v1459_v59 = vpop.eup %1458 }
 0xbb2   :  { %v843_v60 = vmul.f32 %v1459_v59, %v1457_v58 }
 0xbb4   :  { %v845_v61 = vrot.slane %v843_v60, 2 }
 0xbb6   :  { %846 = vrot.lane.b32.xlu1 %v845_v61, %s1587_s3 }
 0xc28   :  { %v1816_v63 = vpop.permute.xlu1 %846 }
 0xc29   :  { %1207 = vmatmul.mubr.msk.f32.vlgmr.msra.gmra.mrb[8].mxu0 %vm203_vm3, %v1816_v63 }
 0xcfc   :  { %v916_v0 = vpop.f32.mrb[8].mxu0 }
 0xcfd   :  { %v923_v1 = vrot.slane %v916_v0, 4  ;;  %v918_v25 = vpop.f32.mrb[9].mxu0  ;;  %v1589_v0 = vmov 1983009808  }
 0xcfe   :  { %v924_v2 = vrot.slane %v918_v25, 4 }
 0xcff   :  { %v927_v3 = vadd.f32 %v923_v1, %v1759_v13  ;;  %v1112_v1 = vunpack.c.l.s4 %v1589_v0 }
 0xd00   :  { %v928_v19 = vadd.f32 %v924_v2, %v1761_v15  ;;  %v1077_v2 = vsel %vm1064_vm7, %v1767_v48, %v1816_v63 }
 0xd01   :  { %v1208_v4 = vmul.f32 -1.442695, %v927_v3 }
 0xd02   :  { %v1209_v17 = vmul.f32 -1.442695, %v928_v19 }
 0xd03   :  { %1460 = vpow2.f32 %v1208_v4  ;;  %v1115_v4 = vshrl.u32 %v50_v12, 7 }
 0xd04   :  { %1462 = vtanh.f32 %v928_v19  ;;  %v1113_v19 = vunpack.c.0.s8 %v1112_v1 }
 0xd0d   :  { %v1461_v21 = vpop.eup %1460 }
 0xd0e   :  { %v935_v5 = vadd.f32 1.0, %v1461_v21  ;;  %v1463_v6 = vpop.eup %1462 }
 0xd10   :  { %1464 = vrcp.f32 %v935_v5 }
 0xd11   :  { %1466 = vpow2.f32 %v1209_v17 }
 0xd1a   :  { %v1465_v9 = vpop.eup %1464 }
 0xd1b   :  { %v946_v10 = vmul.f32 %v1465_v9, %v1463_v6  ;;  %v945_v16 = vmul.f32 %v1465_v9, %v943_v7  ;;  %v1467_v18 = vpop.eup %1466  ;;  %v1081_v6 = vsel %vm1064_vm7, %v1800_v41, %v1784_v8 }
 0xd1c   :  { %v936_v20 = vadd.f32 1.0, %v1467_v18 }
 0xd1d   :  { %948 = vrot.lane.b32.xlu0 %v946_v10, %s1587_s3 }
 0xd1e   :  { %1468 = vrcp.f32 %v936_v20 }
 0xd28   :  { %v1469_v26 = vpop.eup %1468 }
 0xd8f   :  { %v949_v22 = vpop.permute.xlu0 %948 }
 0xd90   :  { %v951_v24 = vadd.f32 %v949_v22, %v945_v16 }
 0xd92   :  { %1470 = vtanh.f32 %v951_v24  ;;  %v1053_v47 = vrot.slane %v951_v24, 6 }
 0xd9c   :  { %v1471_v27 = vpop.eup %1470 }
 0xd9d   :  { %v953_v29 = vmul.f32 %v1471_v27, %v1469_v26 }
 0xd9f   :  { %v955_v30 = vrot.slane %v953_v29, 4 }
 0xda1   :  { %956 = vrot.lane.b32.xlu1 %v955_v30, %s1587_s3 }
 0xe13   :  { %v1824_v31 = vpop.permute.xlu1 %956 }
 0xe14   :  { %1210 = vmatmul.mubr.msk.f32.vlgmr.msra.gmra.mrb[8].mxu1 %vm203_vm3, %v1824_v31 }
 0xee7   :  { %v1026_v32 = vpop.f32.mrb[8].mxu1 }
 0xee8   :  { %v1033_v33 = vrot.slane %v1026_v32, 2  ;;  %v1028_v34 = vpop.f32.mrb[9].mxu1 }
 0xee9   :  { %v1034_v35 = vrot.slane %v1028_v34, 2 }
 0xeea   :  { %v1037_v37 = vadd.f32 %v1033_v33, %v1759_v13  ;;  %v1074_v13 = vsel %vm1064_vm7, %v1746_v11, %v1824_v31 }
 0xeeb   :  { %v1038_v38 = vadd.f32 %v1034_v35, %v1761_v15  ;;  %v1082_v15 = vsel %vm1064_vm7, %v1816_v63, %v1767_v48  ;;  %v1083_v48 = vsel %vm1064_vm7, %v1824_v31, %v1746_v11  ;;  %v1116_v63 = vsub.s32 %v1113_v19, %v1115_v4 }
 0xeec   :  { %v1211_v39 = vmul.f32 -1.442695, %v1037_v37 }
 0xeed   :  { %v1212_v36 = vmul.f32 -1.442695, %v1038_v38 }
 0xeee   :  { %1472 = vpow2.f32 %v1211_v39 }
 0xeef   :  { %1474 = vtanh.f32 %v1038_v38 }
 0xef8   :  { %v1473_v42 = vpop.eup %1472 }
 0xef9   :  { %v1045_v45 = vadd.f32 1.0, %v1473_v42  ;;  %v1475_v46 = vpop.eup %1474 }
 0xefb   :  { %1476 = vrcp.f32 %v1045_v45 }
 0xefc   :  { %1478 = vpow2.f32 %v1212_v36 }
 0xf05   :  { %v1477_v28 = vpop.eup %1476 }
 0xf06   :  { %v1056_v23 = vmul.f32 %v1477_v28, %v1475_v46  ;;  %v1055_v49 = vmul.f32 %v1477_v28, %v1053_v47  ;;  %v1479_v40 = vpop.eup %1478 }
 0xf07   :  { %v1046_v43 = vadd.f32 1.0, %v1479_v40 }
 0xf08   :  { %1058 = vrot.lane.b32.xlu0 %v1056_v23, %s1587_s3 }
 0xf09   :  { %1480 = vrcp.f32 %v1046_v43 }
 0xf0c   :  { %1086 = vrot.lane.b32.xlu0 %v1074_v13, %s1587_s3 }
 0xf10   :  { %1094 = vrot.lane.b32.xlu0 %v1082_v15, %s1587_s3 }
 0xf13   :  { %v1481_v55 = vpop.eup %1480 }
 0xf7a   :  { %v1059_v51 = vpop.permute.xlu0 %1058 }
 0xf7b   :  { %v1061_v50 = vadd.f32 %v1059_v51, %v1055_v49 }
 0xf7d   :  { %1482 = vtanh.f32 %v1061_v50 }
 0xf7e   :  { %v1087_v56 = vpop.permute.xlu0 %1086 }
 0xf82   :  { %v1095_v57 = vpop.permute.xlu0 %1094 }
 0xf83   :  { %v1103_v12 = vsel %vm203_vm3, %v1081_v6, %v1095_v57 }
 0xf87   :  { %v1483_v52 = vpop.eup %1482 }
 0xf88   :  { %v1063_v62 = vmul.f32 %v1483_v52, %v1481_v55 }
 0xf8a   :  { %1128 = vrot.lane.b32.xlu0 %v1063_v62, %s1587_s3  ;;  %v1067_v53 = vrot.slane %v1063_v62, 6 }
 0xf8c   :  { %1068 = vrot.lane.b32.xlu1 %v1067_v53, %s1587_s3 }
 0xf8e   :  { %1139 = vrot.lane.b32.xlu0 %v1061_v50, %s1587_s3 }
 0xf90   :  { %1090 = vrot.lane.b32.xlu1 %v1080_v54, %s1587_s3 }
 0xffc   :  { %v1129_v58 = vpop.permute.xlu0 %1128 }
 0xffd   :  { %1132 = vst.msk [vmem:[#allocation7 - $0x6] sm:$0xc0] %vm1131_vm8, %v1129_v58 }
 0xffe   :  { %v1069_v59 = vpop.permute.xlu1 %1068 }
 0xfff   :  { %v1084_v60 = vsel %vm1064_vm7, %v1069_v59, %v1719_v44  ;;  %v1071_v3 = vsel %vm1064_vm7, %v1719_v44, %v1069_v59 }
0x1000   :  { %v1140_v61 = vpop.permute.xlu0 %1139  ;;  %1098 = vrot.lane.b32.xlu1 %v1084_v60, %s1587_s3  ;;  %v1101_v5 = vsel %vm203_vm3, %v1071_v3, %v1087_v56 }
0x1001   :  { %1142 = vst.msk [vmem:[#allocation8 - $0x6] sm:$0xc0] %vm1131_vm8, %v1140_v61 }
0x1002   :  { %v1091_v25 = vpop.permute.xlu1 %1090 }
0x1003   :  { %v1102_v21 = vsel %vm203_vm3, %v1077_v2, %v1091_v25 }
0x1004   :  { %1133 = vrot.lane.b32.xlu1 %v1063_v62, %s1588_s1  ;;  %v1109_v7 = vcombine.low %v1101_v5, %v1102_v21 }
0x1006   :  { %v1117_v16 = vrot.slane %v1109_v7, %v1116_v63 }
0x1008   :  { %1143 = vrot.lane.b32.xlu1 %v1061_v50, %s1588_s1 }
0x1072   :  { %v1099_v44 = vpop.permute.xlu1 %1098 }
0x1073   :  { %v1104_v9 = vsel %vm203_vm3, %v1083_v48, %v1099_v44 }
0x1074   :  { %v1110_v10 = vcombine.low %v1103_v12, %v1104_v9 }
0x1076   :  { %v1124_v17 = vrot.slane %v1110_v10, %v1116_v63  ;;  %v1134_v18 = vpop.permute.xlu1 %1133 }
0x1077   :  { %1137 = vst.msk [vmem:[#allocation7 - $0x4] sm:$0xc0] %vm1131_vm8, %v1134_v18 }
0x1078   :  { %v1125_v14 = vcombine.low %v1117_v16, %v1124_v17 }
0x1079   :  { %1539 = shalt.err (!%p1536_p6)
}
0x107a   :  { %s1540_s12 = scalar_lea.hbm %s1916_s5, 64 }
0x107b   :  { %p1541_p7 = scmp.ne.s32.totalorder %s1916_s5, %s1540_s12  ;;  %p1544_p8 = scmp.lt.u32.totalorder %s1540_s12, %s1916_s5 }
0x107d   :  { %p1546_p9 = pnand %p1544_p8, %p1541_p7 }
0x107f   :  { %1549 = shalt.err (!%p1546_p9)
}
0x1080   :  { %s1592_s17 = smov 2   ;;  %1127 = vst [vmem:[%s1915_s4] sm:$0xff] %v1125_v14  ;;  %v1144_v11 = vpop.permute.xlu1 %1143  ;;  %s1550_s21 = scalar_lea.vmem %s1168_s8, 64 }
0x1081   :  { %1161 = dma.vmem_to_hbm [thread:$0]  %s1156_s30, 64, %s1916_s5, [#allocation4], %s1588_s1, %s1588_s1, %s1592_s17   ;;  %1147 = vst.msk [vmem:[#allocation8 - $0x4] sm:$0xc0] %vm1131_vm8, %v1144_v11 }
0x1082   :  { %p1551_p10 = scmp.ne.s32.totalorder %s1168_s8, %s1550_s21  ;;  %p1555_p11 = scmp.lt.s32.totalorder %s1168_s8, %s1168_s8 }
0x1083   :  { %p1556_p12 = scmp.lt.s32.totalorder %s1550_s21, %s1550_s21 }
0x1085   :  { %p1557_p13 = por %p1556_p12, %p1555_p11 }
0x1087   :  { %p1558_p0 = pnand %p1557_p13, %p1551_p10 }
0x1089   :  { %1561 = shalt.err (!%p1558_p0)
}
0x108a   :  { %s1562_s24 = scalar_lea.hbm %s1917_s6, 64 }
0x108b   :  { %p1563_p1 = scmp.ne.s32.totalorder %s1917_s6, %s1562_s24  ;;  %p1566_p2 = scmp.lt.u32.totalorder %s1562_s24, %s1917_s6 }
0x108d   :  { %p1568_p3 = pnand %p1566_p2, %p1563_p1 }
0x108f   :  { %1571 = shalt.err (!%p1568_p3)
}
0x1090   :  { %1173 = dma.vmem_to_hbm [thread:$0]  %s1168_s8, 64, %s1917_s6, [#allocation9], %s1588_s1, %s1588_s1, %s1592_s17  }
0x1091   :  { %1576 = dma.done.wait [#allocation4], 64  }
0x1092   :  { %1577 = vsyncadd [#allocation4], 4294967232 }
0x1093   :  { %1578 = dma.done.wait [#allocation9], 64  }
0x1094   :  { %1579 = vsyncadd [#allocation9], 4294967232 }
0x1095   :  { %1182 = vsyncpa [#allocation3], 1 }
0x1096   :  { %1183 = vsyncpa [#allocation6], 1 }
0x1097   :  { %1184 = vsyncpa [#allocation4], 1 }
0x1098   :  { %1185 = vsyncpa [#allocation9], 1 }

</bundles_post_ra>
